<compile_context>
chip_gen: v7x
topology: tpu7x:2x2x1
jax: 0.10.0
libtpu: 0.0.40
codegen_flags: <defaults>
</compile_context>

<pallas_src>
import jax
import jax.numpy as jnp
from jax.experimental import pallas as pl
from jax.experimental.pallas import tpu as pltpu

_LANE = 128      # vreg lane width
_SUB = 8         # vreg sublane width (f32)
_MAX_CB = 2048   # max lane-axis tile width (multiple of 128)


def _normalization_kernel(params_ref, img_ref, out_ref):
    # params_ref: (Rb, 2) f32 -> col 0 = mean, col 1 = 1/std   (per row)
    # img_ref / out_ref: (Rb, Cb) tiles in VMEM, lane-dense last dim
    p = params_ref[...]
    mean = p[:, 0:1]         # (Rb, 1), broadcast over lanes
    inv_std = p[:, 1:2]      # (Rb, 1)
    x = img_ref[...].astype(jnp.float32)
    out_ref[...] = ((x - mean) * inv_std).astype(out_ref.dtype)


def _round_up(x, m):
    return ((x + m - 1) // m) * m


def _default_target_tile_bytes():
    # v7x-class chips (64 MiB VMEM, ~3.2 TB/s HBM): larger tiles amortize the
    # ~0.35 us per-step overhead.  v5e/v6e (128 MiB VMEM, <=1.4 TB/s): 4 MiB
    # already makes that overhead negligible and keeps the footprint small.
    try:
        vmem = pltpu.get_tpu_info().vmem_capacity_bytes
        if vmem <= 80 * 1024 * 1024:
            return 6 * 1024 * 1024
    except Exception:
        pass
    return 4 * 1024 * 1024


def _pick_tiles(N, L, itemsize, target_tile_bytes):
    """Fixed (8,128)-multiple tile shapes; cdiv grid + masking handles ragged edges."""
    target_elems = max(_SUB * _LANE, target_tile_bytes // itemsize)

    # Lane (last) axis: multiple of 128, or full extent when L <= 128.
    Cb = L if L <= _LANE else min(_round_up(L, _LANE), _MAX_CB)

    # Sublane axis: multiple of 8 (or full extent), filling the byte budget.
    if N <= _SUB:
        Rb = N
    else:
        rows = max(_SUB, (target_elems // Cb) // _SUB * _SUB)
        Rb = min(_round_up(N, _SUB), rows)

    # Guarantee >=2 grid steps on the (parallel) row axis when possible, so a
    # degenerate single-tile grid does not serialize onto one v7x TensorCore.
    if pl.cdiv(N, Rb) == 1 and pl.cdiv(L, Cb) == 1 and N >= 2 * _SUB:
        Rb = _round_up(-(-N // 2), _SUB)

    return Rb, Cb


def _normalize_2d(x2d, params, target_tile_bytes=None):
    N, L = x2d.shape
    if target_tile_bytes is None:
        target_tile_bytes = _default_target_tile_bytes()
    itemsize = jnp.dtype(x2d.dtype).itemsize
    Rb, Cb = _pick_tiles(N, L, itemsize, target_tile_bytes)
    grid = (pl.cdiv(N, Rb), pl.cdiv(L, Cb))

    cost = pl.CostEstimate(
        flops=2 * N * L,
        transcendentals=0,
        bytes_accessed=2 * N * L * itemsize + params.size * 4,
    )

    return pl.pallas_call(
        _normalization_kernel,
        out_shape=jax.ShapeDtypeStruct((N, L), x2d.dtype),
        grid=grid,
        in_specs=[
            pl.BlockSpec((Rb, 2), lambda i, j: (i, 0)),    # params (resident over j)
            pl.BlockSpec((Rb, Cb), lambda i, j: (i, j)),   # img tile
        ],
        out_specs=pl.BlockSpec((Rb, Cb), lambda i, j: (i, j)),
        compiler_params=pltpu.CompilerParams(
            dimension_semantics=("parallel", "parallel"),
            vmem_limit_bytes=40 * 1024 * 1024,
        ),
        cost_estimate=cost,
    )(params, x2d)


class Normalization:
    """Pallas port of the PyTorch module: (img - mean[:,None,None]) / std[:,None,None]."""

    def __init__(self, mean, std):
        mean = jnp.asarray(mean, dtype=jnp.float32).reshape(-1)
        std = jnp.asarray(std, dtype=jnp.float32).reshape(-1)
        assert mean.shape == std.shape
        self.num_channels = mean.shape[0]
        # Hoisted out of the per-call path: per-channel [mean, 1/std].
        self._params_c = jnp.stack([mean, 1.0 / std], axis=-1)   # (C, 2)
        self._params_cache = {}                                  # B -> (B*C, 2)

    def _params_for(self, batch):
        p = self._params_cache.get(batch)
        if p is None:
            p = jnp.tile(self._params_c, (batch, 1))             # (B*C, 2)
            self._params_cache[batch] = p
        return p

    def __call__(self, img):
        if not jnp.issubdtype(img.dtype, jnp.floating):
            raise TypeError(
                "Normalization expects a floating-point image dtype, got %s"
                % img.dtype)
        B, C, H, W = img.shape
        assert C == self.num_channels
        x2d = img.reshape(B * C, H * W)       # free reshape for contiguous NCHW
        out2d = _normalize_2d(x2d, self._params_for(B))
        return out2d.reshape(B, C, H, W)


if __name__ == "__main__":
    B, C, H, W = 2, 4, 16, 16

    key = jax.random.PRNGKey(0)
    img = jax.random.normal(key, (B, C, H, W), dtype=jnp.float32)

    # Deterministic "parameters" (the module's __init__ just stores mean/std).
    mean = 0.1 * jnp.arange(C, dtype=jnp.float32) - 0.15
    std = 0.5 + 0.25 * jnp.arange(C, dtype=jnp.float32)

    norm = Normalization(mean, std)
    out = jax.block_until_ready(norm(img))

    # Pure-JAX reference matching the PyTorch broadcast semantics.
    ref = (img - mean[None, :, None, None]) / std[None, :, None, None]

    assert out.shape == img.shape
    assert out.dtype == img.dtype
    # (x - mean) * (1/std) differs from (x - mean)/std by <= a couple f32 ulps.
    assert jnp.allclose(out, ref, rtol=1e-5, atol=1e-6)

    print("KERNEL_OK")
</pallas_src>

<mosaic_0001>
module attributes {stable_mosaic.version = 11 : i64} {
  func.func @_normalization_kernel(%arg0: i32, %arg1: i32, %arg2: memref<8x2xf32, #tpu.memory_space<vmem>>, %arg3: memref<8x256xf32, #tpu.memory_space<vmem>>, %arg4: memref<8x256xf32, #tpu.memory_space<vmem>>) attributes {dimension_semantics = [#tpu.dimension_semantics<parallel>, #tpu.dimension_semantics<parallel>], iteration_bounds = array<i64: 1, 1>, scalar_prefetch = 0 : i64, scratch_operands = 0 : i64, tpu.core_type = #tpu.core_type<tc>, window_params = [{transform_indices = @transform_0, window_bounds = array<i64: 8, 2>}, {transform_indices = @transform_1, window_bounds = array<i64: 8, 256>}, {transform_indices = @transform_2, window_bounds = array<i64: 8, 256>}]} {
    %c0 = arith.constant 0 : index
    %c0_0 = arith.constant 0 : index
    %0 = vector.load %arg2[%c0, %c0_0] : memref<8x2xf32, #tpu.memory_space<vmem>>, vector<8x2xf32>
    %1 = vector.extract_strided_slice %0 {offsets = [0, 0], sizes = [8, 1], strides = [1, 1]} : vector<8x2xf32> to vector<8x1xf32>
    %2 = vector.extract_strided_slice %0 {offsets = [0, 1], sizes = [8, 1], strides = [1, 1]} : vector<8x2xf32> to vector<8x1xf32>
    %c0_1 = arith.constant 0 : index
    %c0_2 = arith.constant 0 : index
    %3 = vector.load %arg3[%c0_1, %c0_2] : memref<8x256xf32, #tpu.memory_space<vmem>>, vector<8x256xf32>
    %4 = vector.broadcast %1 : vector<8x1xf32> to vector<8x256xf32>
    %5 = arith.subf %3, %4 : vector<8x256xf32>
    %6 = vector.broadcast %2 : vector<8x1xf32> to vector<8x256xf32>
    %7 = arith.mulf %5, %6 : vector<8x256xf32>
    %c0_3 = arith.constant 0 : index
    %c0_4 = arith.constant 0 : index
    %8 = vector.load %arg4[%c0_3, %c0_4] : memref<8x256xf32, #tpu.memory_space<vmem>>, vector<8x256xf32>
    tpu.vector_store %arg4[%c0_3, %c0_4], %7 {strides = array<i32>} : memref<8x256xf32, #tpu.memory_space<vmem>>, vector<8x256xf32>,
    return
  }
  func.func @transform_0(%arg0: i32, %arg1: i32) -> (i32, i32) {
    %c0_i32 = arith.constant 0 : i32
    %c0_i32_0 = arith.constant 0 : i32
    return %arg0, %c0_i32 : i32, i32
  }
  func.func @transform_1(%arg0: i32, %arg1: i32) -> (i32, i32) {
    %c0_i32 = arith.constant 0 : i32
    return %arg0, %arg1 : i32, i32
  }
  func.func @transform_2(%arg0: i32, %arg1: i32) -> (i32, i32) {
    %c0_i32 = arith.constant 0 : i32
    return %arg0, %arg1 : i32, i32
  }
}

</mosaic_0001>

<bundles_post_ra>
// kernel: tpu_custom_call.1
= control target key start
LH: loop header
LB: loop body
LE: loop exit
PB: predicated region body
PF: predicated region fallthrough
CT: control target
= control target key end

     0   :  { %7 = vsyncpa [#allocation3], 0  ;;  %s157_s0 = inlined_call_operand.vmem [shape: f32[8,2], index: 0, kind: input, shape index: {}]   ;;  %s158_s1 = inlined_call_operand.hbm [shape: f32[8,256], index: 1, kind: input, shape index: {}]   ;;  %s159_s2 = inlined_call_operand.hbm [shape: f32[8,256], index: 2, kind: output, shape index: {}]  }
   0x1   :  { %8 = vsyncpa [#allocation4], 0  ;;  %s111_s9 = smov [#allocation2]   ;;  %s63_s13 = scalar_lea.hbm %s158_s1, 256 }
   0x2   :  { %s17_s10 = sshll.u32 %s111_s9, 4  ;;  %p64_p0 = scmp.ne.s32.totalorder %s158_s1, %s63_s13  ;;  %s18_s10 = int_to_ptr.vmem [resolvable:$true] %s17_s10 }
   0x3   :  { %p67_p1 = scmp.lt.u32.totalorder %s63_s13, %s158_s1 }
   0x5   :  { %p69_p2 = pnand %p67_p1, %p64_p0 }
   0x7   :  { %72 = shalt.err (!%p69_p2)
}
   0x8   :  { %s73_s18 = scalar_lea.vmem %s18_s10, 256  ;;  %p78_p4 = scmp.lt.s32.totalorder %s18_s10, %s18_s10 }
   0x9   :  { %p74_p3 = scmp.ne.s32.totalorder %s18_s10, %s73_s18  ;;  %p79_p5 = scmp.lt.s32.totalorder %s73_s18, %s73_s18 }
   0xb   :  { %p80_p6 = por %p79_p5, %p78_p4 }
   0xd   :  { %p81_p7 = pnand %p80_p6, %p74_p3 }
   0xf   :  { %84 = shalt.err (!%p81_p7)
}
  0x10   :  { %20 = dma.hbm_to_vmem [thread:$0]  %s158_s1, 256, %s18_s10, [#allocation3]  }
  0x11   :  { %107 = dma.done.wait [#allocation3], 256  }
  0x12   :  { %108 = vsyncadd [#allocation3], 4294967040  ;;  %v112_v0 = vmov 0   ;;  %v24_v1 = vld [vmem:[%s157_s0] sm:$0xff]  ;;  %v113_v2 = vmov 1   ;;  %v26_v5 = vld [vmem:[#allocation2 + $0x8] sm:$0xff] }
  0x13   :  { %61 = vset.pattern.permute.xlu0 %v112_v0  ;;  %v25_v4 = vld [vmem:[#allocation2] sm:$0xff]  ;;  %s114_s23 = smov [#allocation5]  }
  0x14   :  { %29 = vperm.xlu0 %61, %v24_v1   ;;  %s48_s24 = sshll.u32 %s114_s23, 4  ;;  %s49_s24 = int_to_ptr.vmem [resolvable:$true] %s48_s24 }
  0x15   :  { %s85_s1 = scalar_lea.vmem %s49_s24, 256  ;;  %p90_p9 = scmp.lt.s32.totalorder %s49_s24, %s49_s24 }
  0x16   :  { %p86_p8 = scmp.ne.s32.totalorder %s49_s24, %s85_s1  ;;  %p91_p10 = scmp.lt.s32.totalorder %s85_s1, %s85_s1 }
  0x18   :  { %62 = vset.pattern.permute.xlu0 %v113_v2  ;;  %p92_p11 = por %p91_p10, %p90_p9 }
  0x19   :  { %35 = vperm.xlu0 %62, %v24_v1  }
  0x1a   :  { %p93_p12 = pnand %p92_p11, %p86_p8 }
  0x93   :  { %v30_v3 = vpop.permute.xlu0 %29 }
  0x94   :  { %v32_v6 = vsub.f32 %v25_v4, %v30_v3  ;;  %v33_v7 = vsub.f32 %v26_v5, %v30_v3 }
  0x98   :  { %v36_v8 = vpop.permute.xlu0 %35 }
  0x99   :  { %v38_v9 = vmul.f32 %v36_v8, %v32_v6  ;;  %v39_v10 = vmul.f32 %v36_v8, %v33_v7 }
  0x9b   :  { %40 = vst [vmem:[#allocation5] sm:$0xff] %v38_v9  ;;  %41 = vst [vmem:[#allocation5 + $0x8] sm:$0xff] %v39_v10 }
  0x9c   :  { %96 = shalt.err (!%p93_p12)
}
  0x9d   :  { %s97_s26 = scalar_lea.hbm %s159_s2, 256 }
  0x9e   :  { %p98_p13 = scmp.ne.s32.totalorder %s159_s2, %s97_s26  ;;  %p101_p0 = scmp.lt.u32.totalorder %s97_s26, %s159_s2 }
  0xa0   :  { %p103_p1 = pnand %p101_p0, %p98_p13 }
  0xa2   :  { %106 = shalt.err (!%p103_p1)
}
  0xa3   :  { %51 = dma.vmem_to_hbm [thread:$0]  %s49_s24, 256, %s159_s2, [#allocation4]  }
  0xa4   :  { %109 = dma.done.wait [#allocation4], 256  }
  0xa5   :  { %110 = vsyncadd [#allocation4], 4294967040 }
  0xa6   :  { %55 = vsyncpa [#allocation3], 1 }
  0xa7   :  { %56 = vsyncpa [#allocation4], 1 }

</bundles_post_ra>
